<compile_context>
chip_gen: v5e
topology: v5e:2x2
jax: 0.10.0
libtpu: 0.0.40
codegen_flags: <defaults>
</compile_context>

<pallas_src>
import functools

import jax
import jax.numpy as jnp
from jax.experimental import pallas as pl
from jax.experimental.pallas import tpu as pltpu

LN_EPS = 1e-5  # PyTorch nn.LayerNorm default


# ----------------------------- small helpers ---------------------------------
def _round_up(n, m):
    return ((n + m - 1) // m) * m


def _cdiv(a, b):
    return (a + b - 1) // b


def _sublane(dtype):
    # bf16/fp16 pack 2 rows per sublane -> row tiles should be multiples of 16.
    return 16 if jnp.dtype(dtype).itemsize == 2 else 8


def _row_tiling(rows, tile_rows, sub):
    """Row tile <= tile_rows (multiple of `sub`), balanced so padding is minimal
    (and zero whenever rows is a multiple of the sublane granularity)."""
    rows_s = _round_up(rows, sub)
    tm = min(_round_up(tile_rows, sub), rows_s)
    nt = _cdiv(rows_s, tm)
    tm = _round_up(_cdiv(rows_s, nt), sub)
    rows_p = tm * nt
    return tm, rows_p, nt


# -------------------------- constant preparation ------------------------------
def _prep_ln_params(gamma, beta, dim):
    dim_p = _round_up(dim, 128)
    pad = dim_p - dim
    g_p = jnp.pad(gamma.astype(jnp.float32), (0, pad)).reshape(1, dim_p)
    b_p = jnp.pad(beta.astype(jnp.float32), (0, pad)).reshape(1, dim_p)
    return g_p, b_p


def _prep_linear_params(w, bias, matmul_dtype):
    dim, dim_out = w.shape
    dim_p = _round_up(dim, 128)
    dim_out_p = _round_up(dim_out, 128)
    w_p = jnp.pad(w, ((0, dim_p - dim), (0, dim_out_p - dim_out))).astype(matmul_dtype)
    bias_p = jnp.pad(bias.astype(jnp.float32),
                     (0, dim_out_p - dim_out)).reshape(1, dim_out_p)
    return w_p, bias_p


# ------------------------------ LN core (f32) ---------------------------------
def _layernorm_f32(x, g, b, dim, dim_padded):
    # x: (tm, dim_p) f32 with zero-valued pad lanes; g/b: (1, dim_p) f32, zero-padded.
    inv_dim = 1.0 / float(dim)
    mean = jnp.sum(x, axis=-1, keepdims=True) * inv_dim      # pad lanes are 0
    xc = x - mean
    if dim_padded:
        # Only the centered value needs re-masking (pad lanes became -mean).
        lane = jax.lax.broadcasted_iota(jnp.int32, x.shape, 1)
        xc = jnp.where(lane < dim, xc, 0.0)
    var = jnp.sum(xc * xc, axis=-1, keepdims=True) * inv_dim
    inv = jax.lax.rsqrt(var + LN_EPS)
    return xc * inv * g + b


# --------------------- fused PreNorm + Linear kernels -------------------------
def _prenorm_linear_resident_kernel(x_ref, g_ref, b_ref, w_ref, bias_ref, o_ref,
                                    *, dim, dim_padded):
    # W fully resident in VMEM: LN once per row tile, one lane-dense store.
    y = _layernorm_f32(x_ref[...].astype(jnp.float32),
                       g_ref[...], b_ref[...], dim, dim_padded)
    acc = jnp.dot(y.astype(w_ref.dtype), w_ref[...],
                  preferred_element_type=jnp.float32)
    o_ref[...] = (acc + bias_ref[...]).astype(o_ref.dtype)


def _prenorm_linear_tiled_kernel(x_ref, g_ref, b_ref, w_ref, bias_ref, o_ref,
                                 y_ref, *, dim, dim_padded):
    # Column-tiled path: LN only at j == 0, reused from VMEM scratch for all j.
    @pl.when(pl.program_id(1) == 0)
    def _():
        y = _layernorm_f32(x_ref[...].astype(jnp.float32),
                           g_ref[...], b_ref[...], dim, dim_padded)
        y_ref[...] = y.astype(y_ref.dtype)

    acc = jnp.dot(y_ref[...], w_ref[...], preferred_element_type=jnp.float32)
    o_ref[...] = (acc + bias_ref[...]).astype(o_ref.dtype)


def prenorm_linear_fused(x, g_p, b_p, w_p, bias_p, *, dim, dim_out,
                         tile_rows=512, tile_cols=512,
                         w_resident_max_bytes=40 << 20):
    """fn(LayerNorm(x)) with fn = Linear(W, b), as a single fused Pallas kernel."""
    orig_shape = x.shape
    rows = 1
    for s in orig_shape[:-1]:
        rows *= s

    dim_p, dim_out_p = w_p.shape
    dim_padded = dim_p != dim
    sub = _sublane(x.dtype)
    tm, rows_p, nt = _row_tiling(rows, tile_rows, sub)

    x2d = x.reshape(rows, dim)
    if rows_p != rows or dim_padded:            # conditional no-op when aligned
        x2d = jnp.pad(x2d, ((0, rows_p - rows), (0, dim_p - dim)))

    xb = jnp.dtype(x.dtype).itemsize
    wb = jnp.dtype(w_p.dtype).itemsize

    # Footprint if W is held fully resident (double-buffered worst case).
    resident_est = (2 * tm * dim_p * xb                   # x tiles
                    + 2 * dim_p * dim_out_p * wb          # W
                    + 2 * tm * dim_out_p * xb             # out tiles
                    + 2 * (2 * dim_p + dim_out_p) * 4     # gamma/beta/bias
                    + 2 * tm * dim_p * 4)                 # LN intermediates
    use_resident = resident_est <= w_resident_max_bytes

    if use_resident:
        vmem_limit = int(min(max(resident_est + (8 << 20), 32 << 20), 48 << 20))
        out = pl.pallas_call(
            functools.partial(_prenorm_linear_resident_kernel,
                              dim=dim, dim_padded=dim_padded),
            out_shape=jax.ShapeDtypeStruct((rows_p, dim_out_p), x.dtype),
            grid_spec=pltpu.PrefetchScalarGridSpec(
                num_scalar_prefetch=0,
                grid=(nt,),
                in_specs=[
                    pl.BlockSpec((tm, dim_p), lambda i: (i, 0)),       # x rows
                    pl.BlockSpec((1, dim_p), lambda i: (0, 0)),        # gamma
                    pl.BlockSpec((1, dim_p), lambda i: (0, 0)),        # beta
                    pl.BlockSpec((dim_p, dim_out_p), lambda i: (0, 0)),  # W (resident)
                    pl.BlockSpec((1, dim_out_p), lambda i: (0, 0)),    # bias
                ],
                out_specs=pl.BlockSpec((tm, dim_out_p), lambda i: (i, 0)),
            ),
            compiler_params=pltpu.CompilerParams(
                dimension_semantics=("parallel",),
                vmem_limit_bytes=vmem_limit,
            ),
        )(x2d, g_p, b_p, w_p, bias_p)
    else:
        tn = tile_cols if dim_out_p % tile_cols == 0 else (
            256 if dim_out_p % 256 == 0 else 128)
        tn = min(tn, dim_out_p)
        tiled_est = (2 * tm * dim_p * xb
                     + 2 * dim_p * tn * wb
                     + 2 * tm * tn * xb
                     + tm * dim_p * wb                    # y scratch
                     + 2 * (2 * dim_p + tn) * 4
                     + 2 * tm * dim_p * 4)
        vmem_limit = int(min(max(tiled_est + (8 << 20), 32 << 20), 48 << 20))
        out = pl.pallas_call(
            functools.partial(_prenorm_linear_tiled_kernel,
                              dim=dim, dim_padded=dim_padded),
            out_shape=jax.ShapeDtypeStruct((rows_p, dim_out_p), x.dtype),
            grid_spec=pltpu.PrefetchScalarGridSpec(
                num_scalar_prefetch=0,
                grid=(nt, dim_out_p // tn),
                in_specs=[
                    pl.BlockSpec((tm, dim_p), lambda i, j: (i, 0)),    # x rows
                    pl.BlockSpec((1, dim_p), lambda i, j: (0, 0)),     # gamma
                    pl.BlockSpec((1, dim_p), lambda i, j: (0, 0)),     # beta
                    pl.BlockSpec((dim_p, tn), lambda i, j: (0, j)),    # W cols
                    pl.BlockSpec((1, tn), lambda i, j: (0, j)),        # bias
                ],
                out_specs=pl.BlockSpec((tm, tn), lambda i, j: (i, j)),
                scratch_shapes=[pltpu.VMEM((tm, dim_p), w_p.dtype)],   # y reuse
            ),
            compiler_params=pltpu.CompilerParams(
                dimension_semantics=("parallel", "arbitrary"),
                vmem_limit_bytes=vmem_limit,
            ),
        )(x2d, g_p, b_p, w_p, bias_p)

    if rows_p != rows or dim_out_p != dim_out:   # conditional no-op when aligned
        out = out[:rows, :dim_out]
    return out.reshape(*orig_shape[:-1], dim_out)


# ------------------------ standalone LayerNorm (fallback) ---------------------
def _layernorm_kernel(x_ref, g_ref, b_ref, o_ref, *, dim, dim_padded):
    y = _layernorm_f32(x_ref[...].astype(jnp.float32),
                       g_ref[...], b_ref[...], dim, dim_padded)
    o_ref[...] = y.astype(o_ref.dtype)


def layernorm_pallas(x, g_p, b_p, *, dim, tile_rows=1024):
    orig_shape = x.shape
    rows = 1
    for s in orig_shape[:-1]:
        rows *= s
    dim_p = g_p.shape[-1]
    dim_padded = dim_p != dim
    sub = _sublane(x.dtype)
    tm, rows_p, nt = _row_tiling(rows, tile_rows, sub)

    x2d = x.reshape(rows, dim)
    if rows_p != rows or dim_padded:
        x2d = jnp.pad(x2d, ((0, rows_p - rows), (0, dim_p - dim)))

    xb = jnp.dtype(x.dtype).itemsize
    est = 4 * tm * dim_p * max(xb, 4) + 4 * dim_p * 4
    vmem_limit = int(min(max(est + (8 << 20), 32 << 20), 48 << 20))

    out = pl.pallas_call(
        functools.partial(_layernorm_kernel, dim=dim, dim_padded=dim_padded),
        out_shape=jax.ShapeDtypeStruct((rows_p, dim_p), x.dtype),
        grid_spec=pltpu.PrefetchScalarGridSpec(
            num_scalar_prefetch=0,
            grid=(nt,),
            in_specs=[
                pl.BlockSpec((tm, dim_p), lambda i: (i, 0)),
                pl.BlockSpec((1, dim_p), lambda i: (0, 0)),
                pl.BlockSpec((1, dim_p), lambda i: (0, 0)),
            ],
            out_specs=pl.BlockSpec((tm, dim_p), lambda i: (i, 0)),
        ),
        compiler_params=pltpu.CompilerParams(
            dimension_semantics=("parallel",),
            vmem_limit_bytes=vmem_limit,
        ),
    )(x2d, g_p, b_p)

    if rows_p != rows or dim_padded:
        out = out[:rows, :dim]
    return out.reshape(orig_shape)


# ----------------------------------- module -----------------------------------
class Linear:
    """Deterministic Linear(dim_in, dim_out) -- the typical `fn` PreNorm wraps."""

    def __init__(self, w, b):
        self.w = w      # (dim_in, dim_out)
        self.b = b      # (dim_out,)

    def __call__(self, y):
        return jnp.dot(y, self.w) + self.b


class PreNorm:
    """JAX/Pallas equivalent of the PyTorch PreNorm module."""

    def __init__(self, dim, fn, gamma=None, beta=None, *,
                 bf16_matmul=False, w_resident_max_bytes=40 << 20):
        self.dim = dim
        self.fn = fn
        self.gamma = gamma if gamma is not None else jnp.ones((dim,), jnp.float32)
        self.beta = beta if beta is not None else jnp.zeros((dim,), jnp.float32)
        self._w_resident_max_bytes = w_resident_max_bytes
        # One-time constant prep (pad + f32 cast) -- never repeated per forward.
        self._g_p, self._b_p = _prep_ln_params(self.gamma, self.beta, dim)
        self._linear = None
        if isinstance(fn, Linear):
            matmul_dtype = jnp.bfloat16 if bf16_matmul else fn.w.dtype
            w_p, bias_p = _prep_linear_params(fn.w, fn.b, matmul_dtype)
            self._linear = (w_p, bias_p, int(fn.w.shape[1]))

    def __call__(self, x, **kwargs):
        # Hot path: fn is a Linear -> single fused LayerNorm+Linear kernel.
        if self._linear is not None and not kwargs:
            w_p, bias_p, dim_out = self._linear
            return prenorm_linear_fused(
                x, self._g_p, self._b_p, w_p, bias_p,
                dim=self.dim, dim_out=dim_out,
                w_resident_max_bytes=self._w_resident_max_bytes)
        # Generic path: LayerNorm kernel, then arbitrary fn (plain JAX).
        normed = layernorm_pallas(x, self._g_p, self._b_p, dim=self.dim)
        return self.fn(normed, **kwargs)


# ----------------------------------- tests ------------------------------------
def _ref_layernorm(x, gamma, beta):
    mean = jnp.mean(x, axis=-1, keepdims=True)
    var = jnp.mean((x - mean) ** 2, axis=-1, keepdims=True)
    return (x - mean) / jnp.sqrt(var + LN_EPS) * gamma + beta


if __name__ == "__main__":
    key = jax.random.PRNGKey(0)

    # ---- case 1: small ViT-like shapes, fused resident (W-in-VMEM) path ----
    B, N, D = 2, 8, 32
    kx, kg, kb, kw, kbias, knext = jax.random.split(key, 6)

    x = jax.random.normal(kx, (B, N, D), dtype=jnp.float32)
    gamma = jnp.ones((D,), jnp.float32) + 0.1 * jax.random.normal(kg, (D,), jnp.float32)
    beta = 0.1 * jax.random.normal(kb, (D,), jnp.float32)
    w = jax.random.normal(kw, (D, D), jnp.float32) / jnp.sqrt(D)
    bias = 0.1 * jax.random.normal(kbias, (D,), jnp.float32)

    prenorm = PreNorm(D, Linear(w, bias), gamma, beta)
    out = jax.block_until_ready(prenorm(x))
    ref = _ref_layernorm(x, gamma, beta) @ w + bias
    assert out.shape == (B, N, D)
    assert jnp.allclose(out, ref, atol=1e-4, rtol=1e-4), "fused resident mismatch"

    # ---- case 2: multi-row-tile / lane-padded dims (still resident path) ----
    B2, N2, D2, DO2 = 2, 320, 160, 192
    kx2, kg2, kb2, kw2, kbias2 = jax.random.split(knext, 5)
    x2 = jax.random.normal(kx2, (B2, N2, D2), dtype=jnp.float32)
    gamma2 = jnp.ones((D2,), jnp.float32) + 0.1 * jax.random.normal(kg2, (D2,), jnp.float32)
    beta2 = 0.1 * jax.random.normal(kb2, (D2,), jnp.float32)
    w2 = jax.random.normal(kw2, (D2, DO2), jnp.float32) / jnp.sqrt(D2)
    bias2 = 0.1 * jax.random.normal(kbias2, (DO2,), jnp.float32)

    out2 = jax.block_until_ready(PreNorm(D2, Linear(w2, bias2), gamma2, beta2)(x2))
    ref2 = _ref_layernorm(x2, gamma2, beta2) @ w2 + bias2
    assert out2.shape == (B2, N2, DO2)
    assert jnp.allclose(out2, ref2, atol=1e-4, rtol=1e-4), "multi-tile mismatch"

    # ---- case 3: force the column-tiled path (LN-once scratch reuse) ----
    B3, N3, D3, DO3 = 2, 150, 96, 384
    kx3, kg3, kb3, kw3, kbias3 = jax.random.split(kx2, 5)
    x3 = jax.random.normal(kx3, (B3, N3, D3), dtype=jnp.float32)
    gamma3 = jnp.ones((D3,), jnp.float32) + 0.1 * jax.random.normal(kg3, (D3,), jnp.float32)
    beta3 = 0.1 * jax.random.normal(kb3, (D3,), jnp.float32)
    w3 = jax.random.normal(kw3, (D3, DO3), jnp.float32) / jnp.sqrt(D3)
    bias3 = 0.1 * jax.random.normal(kbias3, (DO3,), jnp.float32)

    out3 = jax.block_until_ready(
        PreNorm(D3, Linear(w3, bias3), gamma3, beta3,
                w_resident_max_bytes=0)(x3))          # force tiled fallback
    ref3 = _ref_layernorm(x3, gamma3, beta3) @ w3 + bias3
    assert out3.shape == (B3, N3, DO3)
    assert jnp.allclose(out3, ref3, atol=1e-4, rtol=1e-4), "tiled-path mismatch"

    # ---- case 4: optional bf16 MXU path (f32 accumulate), looser tolerance ----
    out4 = jax.block_until_ready(
        PreNorm(D, Linear(w, bias), gamma, beta, bf16_matmul=True)(x))
    assert jnp.allclose(out4, ref, atol=3e-2, rtol=3e-2), "bf16 matmul mismatch"

    # ---- case 5: generic fn fallback (LayerNorm kernel + arbitrary fn) ----
    generic_fn = lambda y: y * 2.0 + 1.0
    out5 = jax.block_until_ready(PreNorm(D, generic_fn, gamma, beta)(x))
    ref5 = generic_fn(_ref_layernorm(x, gamma, beta))
    assert jnp.allclose(out5, ref5, atol=1e-4, rtol=1e-4), "fallback mismatch"

    print("KERNEL_OK")
</pallas_src>

<mosaic_0001>
module attributes {stable_mosaic.version = 11 : i64} {
  func.func @_prenorm_linear_resident_kernel(%arg0: i32, %arg1: memref<16x128xf32, #tpu.memory_space<vmem>>, %arg2: memref<1x128xf32, #tpu.memory_space<vmem>>, %arg3: memref<1x128xf32, #tpu.memory_space<vmem>>, %arg4: memref<128x128xf32, #tpu.memory_space<vmem>>, %arg5: memref<1x128xf32, #tpu.memory_space<vmem>>, %arg6: memref<16x128xf32, #tpu.memory_space<vmem>>) attributes {dimension_semantics = [#tpu.dimension_semantics<parallel>], iteration_bounds = array<i64: 1>, scalar_prefetch = 0 : i64, scratch_operands = 0 : i64, tpu.core_type = #tpu.core_type<tc>, window_params = [{transform_indices = @transform_0, window_bounds = array<i64: 16, 128>}, {pipeline_mode = #tpu.pipeline_mode<synchronous>, transform_indices = @transform_1, window_bounds = array<i64: 1, 128>}, {pipeline_mode = #tpu.pipeline_mode<synchronous>, transform_indices = @transform_2, window_bounds = array<i64: 1, 128>}, {pipeline_mode = #tpu.pipeline_mode<synchronous>, transform_indices = @transform_3, window_bounds = array<i64: 128, 128>}, {pipeline_mode = #tpu.pipeline_mode<synchronous>, transform_indices = @transform_4, window_bounds = array<i64: 1, 128>}, {transform_indices = @transform_5, window_bounds = array<i64: 16, 128>}]} {
    %c0 = arith.constant 0 : index
    %c0_0 = arith.constant 0 : index
    %0 = vector.load %arg1[%c0, %c0_0] : memref<16x128xf32, #tpu.memory_space<vmem>>, vector<16x128xf32>
    %c0_1 = arith.constant 0 : index
    %c0_2 = arith.constant 0 : index
    %1 = vector.load %arg2[%c0_1, %c0_2] : memref<1x128xf32, #tpu.memory_space<vmem>>, vector<1x128xf32>
    %c0_3 = arith.constant 0 : index
    %c0_4 = arith.constant 0 : index
    %2 = vector.load %arg3[%c0_3, %c0_4] : memref<1x128xf32, #tpu.memory_space<vmem>>, vector<1x128xf32>
    %cst = arith.constant dense<0.000000e+00> : vector<16xf32>
    %3 = vector.multi_reduction <add>, %0, %cst [1] : vector<16x128xf32> to vector<16xf32>
    %4 = vector.shape_cast %3 : vector<16xf32> to vector<16x1xf32>
    %cst_5 = arith.constant 3.125000e-02 : f32
    %5 = vector.broadcast %cst_5 : f32 to vector<16x1xf32>
    %6 = arith.mulf %4, %5 : vector<16x1xf32>
    %7 = vector.broadcast %6 : vector<16x1xf32> to vector<16x128xf32>
    %8 = arith.subf %0, %7 : vector<16x128xf32>
    %9 = tpu.iota {dimensions = array<i32: 1>} : vector<16x128xi32>
    %c32_i32 = arith.constant 32 : i32
    %10 = vector.broadcast %c32_i32 : i32 to vector<16x128xi32>
    %11 = arith.cmpi slt, %9, %10 : vector<16x128xi32>
    %cst_6 = arith.constant 0.000000e+00 : f32
    %12 = vector.broadcast %cst_6 : f32 to vector<16x128xf32>
    %13 = arith.select %11, %8, %12 : vector<16x128xi1>, vector<16x128xf32>
    %14 = arith.mulf %13, %13 : vector<16x128xf32>
    %cst_7 = arith.constant dense<0.000000e+00> : vector<16xf32>
    %15 = vector.multi_reduction <add>, %14, %cst_7 [1] : vector<16x128xf32> to vector<16xf32>
    %16 = vector.shape_cast %15 : vector<16xf32> to vector<16x1xf32>
    %cst_8 = arith.constant 3.125000e-02 : f32
    %17 = vector.broadcast %cst_8 : f32 to vector<16x1xf32>
    %18 = arith.mulf %16, %17 : vector<16x1xf32>
    %cst_9 = arith.constant 9.99999974E-6 : f32
    %19 = vector.broadcast %cst_9 : f32 to vector<16x1xf32>
    %20 = arith.addf %18, %19 : vector<16x1xf32>
    %21 = math.rsqrt %20 : vector<16x1xf32>
    %22 = vector.broadcast %21 : vector<16x1xf32> to vector<16x128xf32>
    %23 = arith.mulf %13, %22 : vector<16x128xf32>
    %24 = vector.broadcast %1 : vector<1x128xf32> to vector<16x128xf32>
    %25 = arith.mulf %23, %24 : vector<16x128xf32>
    %26 = vector.broadcast %2 : vector<1x128xf32> to vector<16x128xf32>
    %27 = arith.addf %25, %26 : vector<16x128xf32>
    %c0_10 = arith.constant 0 : index
    %c0_11 = arith.constant 0 : index
    %28 = vector.load %arg4[%c0_10, %c0_11] : memref<128x128xf32, #tpu.memory_space<vmem>>, vector<128x128xf32>
    %cst_12 = arith.constant dense<0.000000e+00> : vector<16x128xf32>
    %29 = tpu.matmul %27, %28, %cst_12 {dimension_numbers = #tpu.dot_dimension_numbers<[1], [0], [0], [1], [0, 0, 1, 1], [], []>} : vector<16x128xf32>, vector<128x128xf32>, vector<16x128xf32> -> vector<16x128xf32>
    %c0_13 = arith.constant 0 : index
    %c0_14 = arith.constant 0 : index
    %30 = vector.load %arg5[%c0_13, %c0_14] : memref<1x128xf32, #tpu.memory_space<vmem>>, vector<1x128xf32>
    %31 = vector.broadcast %30 : vector<1x128xf32> to vector<16x128xf32>
    %32 = arith.addf %29, %31 : vector<16x128xf32>
    %c0_15 = arith.constant 0 : index
    %c0_16 = arith.constant 0 : index
    %33 = vector.load %arg6[%c0_15, %c0_16] : memref<16x128xf32, #tpu.memory_space<vmem>>, vector<16x128xf32>
    tpu.vector_store %arg6[%c0_15, %c0_16], %32 {strides = array<i32>} : memref<16x128xf32, #tpu.memory_space<vmem>>, vector<16x128xf32>,
    return
  }
  func.func @transform_0(%arg0: i32) -> (i32, i32) {
    %c0_i32 = arith.constant 0 : i32
    %c0_i32_0 = arith.constant 0 : i32
    return %arg0, %c0_i32 : i32, i32
  }
  func.func @transform_1(%arg0: i32) -> (i32, i32) {
    %c0_i32 = arith.constant 0 : i32
    %c0_i32_0 = arith.constant 0 : i32
    %c0_i32_1 = arith.constant 0 : i32
    return %c0_i32, %c0_i32_0 : i32, i32
  }
  func.func @transform_2(%arg0: i32) -> (i32, i32) {
    %c0_i32 = arith.constant 0 : i32
    %c0_i32_0 = arith.constant 0 : i32
    %c0_i32_1 = arith.constant 0 : i32
    return %c0_i32, %c0_i32_0 : i32, i32
  }
  func.func @transform_3(%arg0: i32) -> (i32, i32) {
    %c0_i32 = arith.constant 0 : i32
    %c0_i32_0 = arith.constant 0 : i32
    %c0_i32_1 = arith.constant 0 : i32
    return %c0_i32, %c0_i32_0 : i32, i32
  }
  func.func @transform_4(%arg0: i32) -> (i32, i32) {
    %c0_i32 = arith.constant 0 : i32
    %c0_i32_0 = arith.constant 0 : i32
    %c0_i32_1 = arith.constant 0 : i32
    return %c0_i32, %c0_i32_0 : i32, i32
  }
  func.func @transform_5(%arg0: i32) -> (i32, i32) {
    %c0_i32 = arith.constant 0 : i32
    %c0_i32_0 = arith.constant 0 : i32
    return %arg0, %c0_i32 : i32, i32
  }
}

</mosaic_0001>

<bundles_post_ra>
// kernel: tpu_custom_call.1
= control target key start
LH: loop header
LB: loop body
LE: loop exit
PB: predicated region body
PF: predicated region fallthrough
CT: control target
= control target key end

     0   :  { %10 = vsyncpa [#allocation3], 0  ;;  %s394_s0 = inlined_call_operand.hbm [shape: f32[16,128], index: 0, kind: input, shape index: {}]   ;;  %s395_s1 = inlined_call_operand.hbm [shape: f32[1,128], index: 1, kind: input, shape index: {}]   ;;  %s396_s2 = inlined_call_operand.vmem [shape: f32[1,128], index: 2, kind: input, shape index: {}]   ;;  %s397_s3 = inlined_call_operand.hbm [shape: f32[128,128], index: 3, kind: input, shape index: {}]   ;;  %s398_s4 = inlined_call_operand.vmem [shape: f32[1,128], index: 4, kind: input, shape index: {}]   ;;  %s399_s5 = inlined_call_operand.hbm [shape: f32[16,128], index: 5, kind: output, shape index: {}]  }
   0x1   :  { %11 = vsyncpa [#allocation6], 0  ;;  %s31_s20 = sshll.u32 %s395_s1, 4  ;;  %s32_s20 = int_to_ptr.hbm [resolvable:$true] %s31_s20 }
   0x2   :  { %12 = vsyncpa [#allocation4], 0  ;;  %s321_s21 = smov [#allocation5]   ;;  %s17_s25 = sshll.u32 %s394_s0, 4  ;;  %s18_s25 = int_to_ptr.hbm [resolvable:$true] %s17_s25 }
   0x3   :  { %s33_s22 = sshll.u32 %s321_s21, 4  ;;  %s322_s26 = smov [#allocation2]   ;;  %s34_s22 = int_to_ptr.vmem [resolvable:$true] %s33_s22 }
   0x4   :  { %36 = dma.hbm_to_vmem [thread:$0]  %s32_s20, 16, %s34_s22, [#allocation6]  }
   0x5   :  { %s19_s27 = sshll.u32 %s322_s26, 4  ;;  %s323_s28 = smov 128   ;;  %s20_s27 = int_to_ptr.vmem [resolvable:$true] %s19_s27 }
   0x6   :  { %s324_s29 = smov 8   ;;  %s43_s6 = sshll.u32 %s397_s3, 4  ;;  %s44_s6 = int_to_ptr.hbm [resolvable:$true] %s43_s6 }
   0x7   :  { %25 = dma.hbm_to_vmem [thread:$0]  %s18_s25, 256, %s20_s27, [#allocation3], %s323_s28, %s323_s28, %s324_s29  }
   0x8   :  { %s325_s7 = smov [#allocation7]  }
   0x9   :  { %s45_s8 = sshll.u32 %s325_s7, 4  ;;  %s46_s8 = int_to_ptr.vmem [resolvable:$true] %s45_s8 }
   0xa   :  { %51 = dma.hbm_to_vmem [thread:$0]  %s44_s6, 2048, %s46_s8, [#allocation6], %s323_s28, %s323_s28, %s324_s29  }
   0xb   :  { %315 = dma.done.wait [#allocation3], 256  }
   0xc   :  { %316 = vsyncadd [#allocation3], 4294967040 }
   0xd   :  { %317 = dma.done.wait [#allocation6], 2064  }
   0xe   :  { %318 = vsyncadd [#allocation6], 4294965232  ;;  %v66_v0 = vld [vmem:[#allocation2] sm:$0xff]  ;;  %v67_v1 = vld [vmem:[#allocation2 + $0x8] sm:$0xff]  ;;  %v78_v4 = vlaneseq  ;;  %s176_s14 = sshll.u32 %s399_s5, 4  ;;  %s177_s14 = int_to_ptr.hbm [resolvable:$true] %s176_s14 }
   0xf   :  { %70 = vadd.xlane.f32.xlu0 %v66_v0  ;;  %v140_v2 = vld [vmem:[#allocation7 + $0x78] sm:$0xff]  ;;  %v139_v3 = vld [vmem:[#allocation7 + $0x70] sm:$0xff]  ;;  %v138_v16 = vld [vmem:[#allocation7 + $0x68] sm:$0xff] }
  0x10   :  { %145 = vmatpush.msra.mxu0 %v140_v2  ;;  %190 = vmatpush.msra.mxu1 %v140_v2  ;;  %v79_v5 = vand.u32 127, %v78_v4  ;;  %v137_v17 = vld [vmem:[#allocation7 + $0x60] sm:$0xff]  ;;  %v136_v18 = vld [vmem:[#allocation7 + $0x58] sm:$0xff]  ;;  %v135_v19 = vld [vmem:[#allocation7 + $0x50] sm:$0xff] }
  0x11   :  { %v134_v20 = vld [vmem:[#allocation7 + $0x48] sm:$0xff]  ;;  %v133_v21 = vld [vmem:[#allocation7 + $0x40] sm:$0xff]  ;;  %v132_v22 = vld [vmem:[#allocation7 + $0x38] sm:$0xff] }
  0x12   :  { %146 = vmatpush.msra.mxu0 %v139_v3  ;;  %191 = vmatpush.msra.mxu1 %v139_v3  ;;  %vm80_vm0 = vcmp.lt.s32.totalorder %v79_v5, 32  ;;  %v131_v23 = vld [vmem:[#allocation7 + $0x30] sm:$0xff]  ;;  %v130_v24 = vld [vmem:[#allocation7 + $0x28] sm:$0xff]  ;;  %v129_v25 = vld [vmem:[#allocation7 + $0x20] sm:$0xff] }
  0x13   :  { %v128_v26 = vld [vmem:[#allocation7 + $0x18] sm:$0xff]  ;;  %v127_v27 = vld [vmem:[#allocation7 + $0x10] sm:$0xff]  ;;  %v126_v28 = vld [vmem:[#allocation7 + $0x8] sm:$0xff] }
  0x14   :  { %147 = vmatpush.msra.mxu0 %v138_v16  ;;  %192 = vmatpush.msra.mxu1 %v138_v16  ;;  %v125_v29 = vld [vmem:[#allocation7] sm:$0xff]  ;;  %v212_v44 = vld [vmem:[#allocation5] ss:$0 sm:$0xff]  ;;  %v213_v48 = vld [vmem:[%s396_s2] ss:$0 sm:$0xff]  ;;  %s326_s2 = smov [#allocation8]  }
  0x15   :  { %v214_v58 = vld [vmem:[%s398_s4] ss:$0 sm:$0xff]  ;;  %s174_s11 = sshll.u32 %s326_s2, 4  ;;  %s175_s11 = int_to_ptr.vmem [resolvable:$true] %s174_s11 }
  0x16   :  { %148 = vmatpush.msra.mxu0 %v137_v17  ;;  %193 = vmatpush.msra.mxu1 %v137_v17 }
  0x17   :  { %72 = vadd.xlane.f32.xlu0 %v67_v1 }
  0x18   :  { %149 = vmatpush.msra.mxu0 %v136_v18  ;;  %194 = vmatpush.msra.mxu1 %v136_v18 }
  0x1a   :  { %150 = vmatpush.msra.mxu0 %v135_v19  ;;  %195 = vmatpush.msra.mxu1 %v135_v19 }
  0x1c   :  { %151 = vmatpush.msra.mxu0 %v134_v20  ;;  %196 = vmatpush.msra.mxu1 %v134_v20 }
  0x1e   :  { %152 = vmatpush.msra.mxu0 %v133_v21  ;;  %197 = vmatpush.msra.mxu1 %v133_v21 }
  0x20   :  { %153 = vmatpush.msra.mxu0 %v132_v22  ;;  %198 = vmatpush.msra.mxu1 %v132_v22 }
  0x22   :  { %154 = vmatpush.msra.mxu0 %v131_v23  ;;  %199 = vmatpush.msra.mxu1 %v131_v23 }
  0x24   :  { %155 = vmatpush.msra.mxu0 %v130_v24  ;;  %200 = vmatpush.msra.mxu1 %v130_v24 }
  0x26   :  { %156 = vmatpush.msra.mxu0 %v129_v25  ;;  %201 = vmatpush.msra.mxu1 %v129_v25 }
  0x28   :  { %157 = vmatpush.msra.mxu0 %v128_v26  ;;  %202 = vmatpush.msra.mxu1 %v128_v26 }
  0x2a   :  { %158 = vmatpush.msra.mxu0 %v127_v27  ;;  %203 = vmatpush.msra.mxu1 %v127_v27 }
  0x2c   :  { %159 = vmatpush.msra.mxu0 %v126_v28  ;;  %204 = vmatpush.msra.mxu1 %v126_v28 }
  0x2e   :  { %160 = vmatpush.msra.mxu0 %v125_v29  ;;  %205 = vmatpush.msra.mxu1 %v125_v29 }
  0x82   :  { %v71_v6 = vpop.xlane.xlu0 %70 }
  0x83   :  { %v74_v7 = vmul.f32 0.03125, %v71_v6 }
  0x85   :  { %v76_v8 = vsub.f32 %v66_v0, %v74_v7 }
  0x87   :  { %v372_v9 = vsel %vm80_vm0, %v76_v8, 0.0 }
  0x88   :  { %v83_v10 = vmul.f32 %v372_v9, %v372_v9 }
  0x8a   :  { %85 = vadd.xlane.f32.xlu1 %v83_v10  ;;  %v73_v11 = vpop.xlane.xlu0 %72 }
  0x8b   :  { %v75_v12 = vmul.f32 0.03125, %v73_v11 }
  0x8d   :  { %v77_v13 = vsub.f32 %v67_v1, %v75_v12 }
  0x8f   :  { %v376_v14 = vsel %vm80_vm0, %v77_v13, 0.0 }
  0x90   :  { %v84_v15 = vmul.f32 %v376_v14, %v376_v14 }
  0x92   :  { %87 = vadd.xlane.f32.xlu1 %v84_v15 }
  0xfd   :  { %v86_v30 = vpop.xlane.xlu1 %85 }
  0xfe   :  { %v89_v31 = vmul.f32 0.03125, %v86_v30 }
 0x100   :  { %v91_v32 = vadd.f32 1e-05, %v89_v31 }
 0x102   :  { %215 = vrsqrt.f32 %v91_v32  ;;  %vm99_vm2 = vweird.f32 %v91_v32 }
 0x105   :  { %v88_v33 = vpop.xlane.xlu1 %87 }
 0x106   :  { %v90_v34 = vmul.f32 0.03125, %v88_v33 }
 0x108   :  { %v216_v35 = vpop.eup %215  ;;  %v92_v36 = vadd.f32 1e-05, %v90_v34 }
 0x109   :  { %v94_v37 = vmul.f32 %v216_v35, %v91_v32  ;;  %vm100_vm1 = vweird.f32 %v216_v35 }
 0x10a   :  { %217 = vrsqrt.f32 %v92_v36  ;;  %vm101_vm3 = vmor %vm99_vm2, %vm100_vm1  ;;  %vm109_vm5 = vweird.f32 %v92_v36 }
 0x10b   :  { %v95_v38 = vmul.f32 %v216_v35, %v94_v37 }
 0x10d   :  { %v96_v39 = vmul.f32 0.5, %v95_v38 }
 0x10f   :  { %v97_v40 = vsub.f32 1.5, %v96_v39 }
 0x110   :  { %v218_v41 = vpop.eup %217 }
 0x111   :  { %v98_v42 = vmul.f32 %v216_v35, %v97_v40  ;;  %v104_v43 = vmul.f32 %v218_v41, %v92_v36  ;;  %vm110_vm4 = vweird.f32 %v218_v41 }
 0x112   :  { %vm111_vm6 = vmor %vm109_vm5, %vm110_vm4 }
 0x113   :  { %v105_v45 = vmul.f32 %v218_v41, %v104_v43  ;;  %v102_v46 = vsel %vm101_vm3, %v216_v35, %v98_v42 }
 0x114   :  { %v113_v47 = vmul.f32 %v102_v46, %v372_v9 }
 0x115   :  { %v106_v49 = vmul.f32 0.5, %v105_v45 }
 0x116   :  { %v118_v50 = vmul.f32 %v212_v44, %v113_v47 }
 0x117   :  { %v107_v51 = vsub.f32 1.5, %v106_v49 }
 0x118   :  { %v123_v52 = vadd.f32 %v213_v48, %v118_v50 }
 0x119   :  { %v108_v53 = vmul.f32 %v218_v41, %v107_v51 }
 0x11a   :  { %161 = vmatmul.f32.vlgmr.msra.gmra.mxu0 %v123_v52 }
 0x11b   :  { %v112_v54 = vsel %vm111_vm6, %v218_v41, %v108_v53 }
 0x11c   :  { %v114_v55 = vmul.f32 %v112_v54, %v376_v14 }
 0x11e   :  { %v119_v56 = vmul.f32 %v212_v44, %v114_v55 }
 0x120   :  { %v124_v57 = vadd.f32 %v213_v48, %v119_v56 }
 0x122   :  { %164 = vmatmul.f32.vlgmr.msra.gmra.mxu1 %v124_v57 }
 0x197   :  { %v162_v59 = vpop.f32.mrf.mxu0 }
 0x198   :  { %v163_v60 = vadd.f32 %v214_v58, %v162_v59 }
 0x19a   :  { %168 = vst [vmem:[#allocation8] sm:$0xff] %v163_v60 }
 0x19f   :  { %v165_v61 = vpop.f32.mrf.mxu1 }
 0x1a0   :  { %v166_v62 = vadd.f32 %v214_v58, %v165_v61 }
 0x1a2   :  { %169 = vst [vmem:[#allocation8 + $0x8] sm:$0xff] %v166_v62 }
 0x1a3   :  { %182 = dma.vmem_to_hbm [thread:$0]  %s175_s11, 256, %s177_s14, [#allocation4], %s323_s28, %s323_s28, %s324_s29  }
 0x1a4   :  { %319 = dma.done.wait [#allocation4], 256  }
 0x1a5   :  { %320 = vsyncadd [#allocation4], 4294967040 }
 0x1a6   :  { %187 = vsyncpa [#allocation3], 1 }
 0x1a7   :  { %188 = vsyncpa [#allocation6], 1 }
 0x1a8   :  { %189 = vsyncpa [#allocation4], 1 }

</bundles_post_ra>
